<compile_context>
chip_gen: v7x
topology: tpu7x:2x2x1
jax: 0.10.0
libtpu: 0.0.40
codegen_flags: <defaults>
</compile_context>

<pallas_src>
import math

import numpy as np
import jax
import jax.numpy as jnp
from jax.experimental import pallas as pl
from jax.experimental.pallas import tpu as pltpu


def _nru_kernel(x_ref, h_ref, m_ref,
                whx_ref, whh_ref, whm_ref, bh_ref,
                wgh_ref, wgm_ref, bg_ref,
                wuh_ref, wum_ref, bu_ref,
                g4_ref, sb4_ref, gt4_ref,
                pqa_ref, ra_ref, pqb_ref, rb_ref,
                out_ref):
    f32 = jnp.float32
    bt = x_ref.shape[0]
    H = whx_ref.shape[1]
    M = m_ref.shape[1]
    pad_w = out_ref.shape[1] - (H + M)

    x = x_ref[...]
    hp = h_ref[...]
    mem = m_ref[...]

    # h = relu(hmi2h(cat(x, h_prev, mem)))  -- three accumulated dots, broadcast bias.
    h = (jnp.dot(x, whx_ref[...], preferred_element_type=f32)
         + jnp.dot(hp, whh_ref[...], preferred_element_type=f32)
         + jnp.dot(mem, whm_ref[...], preferred_element_type=f32)
         + bh_ref[...])
    h = jnp.maximum(h, 0.0)

    # gate = [alpha | -beta]  (use_relu=False -> no relu on the gates)
    gate = (jnp.dot(h, wgh_ref[...], preferred_element_type=f32)
            + jnp.dot(mem, wgm_ref[...], preferred_element_type=f32)
            + bg_ref[...])                                           # [bt, 2k]
    # uu = [u0a | u0b | u1a | u1b]  (both v-heads fused, lane 0 aligned)
    uu = (jnp.dot(h, wuh_ref[...], preferred_element_type=f32)
          + jnp.dot(mem, wum_ref[...], preferred_element_type=f32)
          + bu_ref[...])                                             # [bt, 4*sqm]

    # |u|^5 over the whole uu slab, 3 multiplies.
    au = jnp.abs(uu)
    au2 = au * au
    au5 = au2 * au2 * au

    # ||v[b,j,:]||_5^5 = (group-sum of |u0|^5) * (per-head sum of |u1|^5)
    # Widened selection matrices select the relevant uu lanes (zeros elsewhere),
    # so no lane slicing of uu is needed.
    s = (jnp.dot(au5, g4_ref[...], preferred_element_type=f32)
         * jnp.dot(au5, sb4_ref[...], preferred_element_type=f32))   # [bt, 2k]

    # F.normalize(p=5, eps=1e-12): denominator = max(s^0.2, 1e-12).  For any
    # representable f32 s>0, s^0.2 > 1e-12, so multiplier = s^-0.2; s==0 -> 1e12.
    inv_norm = jnp.where(s > 0.0,
                         jnp.exp(-0.2 * jnp.log(jnp.maximum(s, 1e-45))),
                         1e12)
    coef = gate * inv_norm                                            # [bt, 2k]
    # Expand coef onto the u0 lanes of uu (zeros on u1 lanes).
    coef_r = jnp.dot(coef, gt4_ref[...], preferred_element_type=f32)  # [bt, 4*sqm]
    amat = coef_r * uu

    # add head (alpha):   1/k mean folded into pqa
    left_a = jnp.dot(amat, pqa_ref[...], preferred_element_type=f32)  # [bt, M]
    right_a = jnp.dot(uu, ra_ref[...], preferred_element_type=f32)    # [bt, M]
    # forget head (beta was pre-negated in the gate columns):
    left_b = jnp.dot(amat, pqb_ref[...], preferred_element_type=f32)  # [bt, M]
    right_b = jnp.dot(uu, rb_ref[...], preferred_element_type=f32)    # [bt, M]

    mem_new = mem + left_a * right_a + left_b * right_b

    # Single lane-dense store: [h | mem_new | zero pad] -> one unmasked vst row.
    out = jnp.concatenate([h, mem_new], axis=1)
    if pad_w:
        out = jnp.concatenate([out, jnp.zeros((bt, pad_w), f32)], axis=1)
    out_ref[...] = out


def _selection_matrices(k, memory_size, sqm):
    """Host-side numpy constants for the factorized view/normalize/mean path.

    All matrices act on the full uu slab [u0a | u0b | u1a | u1b] (4*sqm rows)
    so the kernel never slices uu.
    """
    M = memory_size
    g = M // sqm                       # == sqm // k
    S4 = 4 * sqm

    r = np.arange(sqm)
    j = np.arange(k)
    m = np.arange(M)
    G = (r[:, None] // g == j[None, :]).astype(np.float32)        # [sqm, k]
    GT = G.T.copy()                                                # [k, sqm]
    PQ = (r[:, None] % g == m[None, :] // sqm).astype(np.float32)  # [sqm, M]
    R = (m[None, :] % sqm == r[:, None]).astype(np.float32)        # [sqm, M]

    # group-sum of |u0|^5 per gate unit, per head -> [B, 2k]
    G4 = np.zeros((S4, 2 * k), np.float32)
    G4[0:sqm, 0:k] = G
    G4[sqm:2 * sqm, k:2 * k] = G

    # per-head sum of |u1|^5 broadcast over that head's k columns
    SB4 = np.zeros((S4, 2 * k), np.float32)
    SB4[2 * sqm:3 * sqm, 0:k] = 1.0
    SB4[3 * sqm:4 * sqm, k:2 * k] = 1.0

    # expand coef[b, 2k] onto the u0 lanes of uu (zeros on u1 lanes)
    GT4 = np.zeros((2 * k, S4), np.float32)
    GT4[0:k, 0:sqm] = GT
    GT4[k:2 * k, sqm:2 * sqm] = GT

    # add head: left from u0a lanes (1/k mean folded), right = tiled u1a
    PQA = np.zeros((S4, M), np.float32)
    PQA[0:sqm, :] = PQ / float(k)
    RA = np.zeros((S4, M), np.float32)
    RA[2 * sqm:3 * sqm, :] = R
    # forget head (sign already folded into the -beta gate columns)
    PQB = np.zeros((S4, M), np.float32)
    PQB[sqm:2 * sqm, :] = PQ / float(k)
    RB = np.zeros((S4, M), np.float32)
    RB[3 * sqm:4 * sqm, :] = R

    return dict(g4=jnp.asarray(G4), sb4=jnp.asarray(SB4), gt4=jnp.asarray(GT4),
                pqa=jnp.asarray(PQA), ra=jnp.asarray(RA),
                pqb=jnp.asarray(PQB), rb=jnp.asarray(RB))


def pack_nru_params(params, input_size, hidden_size, memory_size, k):
    """One-time host-side packing: per-source slabs, fused heads, negated beta."""
    sqm = int(math.sqrt(memory_size * k))
    assert sqm * sqm == memory_size * k and memory_size % sqm == 0
    I, H, M = input_size, hidden_size, memory_size

    wh, bh = params["wh"], params["bh"]   # [I+H+M, H] rows [x | h | mem], [1, H]
    whx, whh, whm = wh[0:I], wh[I:I + H], wh[I + H:I + H + M]

    wa, ba = params["wa"], params["ba"]
    wb, bb = params["wb"], params["bb"]
    wva, bva = params["wva"], params["bva"]
    wvb, bvb = params["wvb"], params["bvb"]

    # gate columns [alpha | -beta]; split rows by source (h vs mem).
    wg = jnp.concatenate([wa, -wb], axis=1)               # [H+M, 2k]
    bg = jnp.concatenate([ba, -bb], axis=1)                # [1, 2k]
    wgh, wgm = wg[0:H], wg[H:H + M]

    # uu columns [u0a | u0b | u1a | u1b]; split rows by source.
    wu = jnp.concatenate([wva[:, 0:sqm], wvb[:, 0:sqm],
                          wva[:, sqm:], wvb[:, sqm:]], axis=1)   # [H+M, 4*sqm]
    bu = jnp.concatenate([bva[:, 0:sqm], bvb[:, 0:sqm],
                          bva[:, sqm:], bvb[:, sqm:]], axis=1)   # [1, 4*sqm]
    wuh, wum = wu[0:H], wu[H:H + M]

    packed = dict(whx=whx, whh=whh, whm=whm, bh=bh,
                  wgh=wgh, wgm=wgm, bg=bg,
                  wuh=wuh, wum=wum, bu=bu)
    packed.update(_selection_matrices(k, M, sqm))
    return packed


_CONST_NAMES = ("whx", "whh", "whm", "bh",
                "wgh", "wgm", "bg",
                "wuh", "wum", "bu",
                "g4", "sb4", "gt4",
                "pqa", "ra", "pqb", "rb")


def _round_up(a, m):
    return ((a + m - 1) // m) * m


def nru_cell_forward(x, h_prev, mem_prev, packed, *, batch_tile=512):
    B, I = x.shape
    H = h_prev.shape[1]
    M = mem_prev.shape[1]
    OUT = H + M
    OUT_PAD = _round_up(OUT, 128)

    # Batch tiling: grid over B; biggest tile that comfortably fits scoped VMEM
    # on v5e/v6e/v7x at these feature sizes.
    if B <= batch_tile:
        bt = max(8, _round_up(B, 8))
        Bp = bt
    else:
        bt = batch_tile
        Bp = _round_up(B, bt)
    if Bp != B:
        pad = Bp - B
        x = jnp.pad(x, ((0, pad), (0, 0)))
        h_prev = jnp.pad(h_prev, ((0, pad), (0, 0)))
        mem_prev = jnp.pad(mem_prev, ((0, pad), (0, 0)))

    consts = [packed[n] for n in _CONST_NAMES]

    def row_spec(d):
        return pl.BlockSpec((bt, d), lambda i: (i, 0))

    def const_spec(a):
        return pl.BlockSpec(a.shape, lambda i: (0, 0))   # VMEM-resident, DMA'd once

    out = pl.pallas_call(
        _nru_kernel,
        out_shape=jax.ShapeDtypeStruct((Bp, OUT_PAD), jnp.float32),
        grid=(Bp // bt,),
        in_specs=[row_spec(I), row_spec(H), row_spec(M)]
                 + [const_spec(a) for a in consts],
        out_specs=pl.BlockSpec((bt, OUT_PAD), lambda i: (i, 0)),
        compiler_params=pltpu.CompilerParams(
            dimension_semantics=("parallel",)),
    )(x, h_prev, mem_prev, *consts)

    return {"h": out[0:B, 0:H], "memory": out[0:B, H:H + M]}


def nru_cell_reference(x, h_prev, mem_prev, params, k, memory_size):
    """Pure-JAX mirror of the torch forward (for verification)."""
    c_in = jnp.concatenate([x, h_prev, mem_prev], axis=1)
    h = jax.nn.relu(c_in @ params["wh"] + params["bh"])
    hm = jnp.concatenate([h, mem_prev], axis=1)
    alpha = hm @ params["wa"] + params["ba"]
    beta = hm @ params["wb"] + params["bb"]
    ua = hm @ params["wva"] + params["bva"]
    ub = hm @ params["wvb"] + params["bvb"]
    sqm = ua.shape[1] // 2

    def v_norm(u):
        u0, u1 = u[:, :sqm], u[:, sqm:]
        v = (u0[:, :, None] * u1[:, None, :]).reshape(-1, k, memory_size)
        n = jnp.sum(jnp.abs(v) ** 5, axis=2, keepdims=True) ** 0.2
        return v / jnp.maximum(n, 1e-12)

    add = alpha[:, :, None] * v_norm(ua)
    forget = beta[:, :, None] * v_norm(ub)
    mem_new = mem_prev + jnp.mean(add - forget, axis=1)
    return {"h": h, "memory": mem_new}


if __name__ == "__main__":
    # Small shapes consistent with the module: memory_size=64, k=4 -> sqrt_memk=16.
    B, INPUT, HIDDEN, MEMORY, K = 8, 16, 32, 64, 4
    SQM = int(math.sqrt(MEMORY * K))
    assert SQM * SQM == MEMORY * K

    key = jax.random.PRNGKey(0)
    keys = jax.random.split(key, 16)

    def linear_params(kw, kb, fan_in, fan_out):
        bound = 1.0 / math.sqrt(fan_in)
        w = jax.random.uniform(kw, (fan_in, fan_out), jnp.float32, -bound, bound)
        b = jax.random.uniform(kb, (1, fan_out), jnp.float32, -bound, bound)
        return w, b

    wh, bh = linear_params(keys[0], keys[1], INPUT + HIDDEN + MEMORY, HIDDEN)
    wa, ba = linear_params(keys[2], keys[3], HIDDEN + MEMORY, K)
    wb, bb = linear_params(keys[4], keys[5], HIDDEN + MEMORY, K)
    wva, bva = linear_params(keys[6], keys[7], HIDDEN + MEMORY, 2 * SQM)
    wvb, bvb = linear_params(keys[8], keys[9], HIDDEN + MEMORY, 2 * SQM)
    params = dict(wh=wh, bh=bh, wa=wa, ba=ba, wb=wb, bb=bb,
                  wva=wva, bva=bva, wvb=wvb, bvb=bvb)

    x = jax.random.normal(keys[10], (B, INPUT), jnp.float32)
    h0 = jax.random.normal(keys[11], (B, HIDDEN), jnp.float32)
    m0 = jax.random.normal(keys[12], (B, MEMORY), jnp.float32)

    packed = pack_nru_params(params, INPUT, HIDDEN, MEMORY, K)
    out = nru_cell_forward(x, h0, m0, packed)
    jax.block_until_ready(out)

    ref = nru_cell_reference(x, h0, m0, params, K, MEMORY)
    assert out["h"].shape == (B, HIDDEN) and out["memory"].shape == (B, MEMORY)
    assert bool(jnp.allclose(out["h"], ref["h"], atol=5e-3, rtol=5e-3))
    assert bool(jnp.allclose(out["memory"], ref["memory"], atol=5e-3, rtol=5e-3))

    print("KERNEL_OK")
</pallas_src>

<mosaic_0001>
module attributes {stable_mosaic.version = 11 : i64} {
  func.func @_nru_kernel(%arg0: i32, %arg1: memref<8x16xf32, #tpu.memory_space<vmem>>, %arg2: memref<8x32xf32, #tpu.memory_space<vmem>>, %arg3: memref<8x64xf32, #tpu.memory_space<vmem>>, %arg4: memref<16x32xf32, #tpu.memory_space<vmem>>, %arg5: memref<32x32xf32, #tpu.memory_space<vmem>>, %arg6: memref<64x32xf32, #tpu.memory_space<vmem>>, %arg7: memref<1x32xf32, #tpu.memory_space<vmem>>, %arg8: memref<32x8xf32, #tpu.memory_space<vmem>>, %arg9: memref<64x8xf32, #tpu.memory_space<vmem>>, %arg10: memref<1x8xf32, #tpu.memory_space<vmem>>, %arg11: memref<32x64xf32, #tpu.memory_space<vmem>>, %arg12: memref<64x64xf32, #tpu.memory_space<vmem>>, %arg13: memref<1x64xf32, #tpu.memory_space<vmem>>, %arg14: memref<64x8xf32, #tpu.memory_space<vmem>>, %arg15: memref<64x8xf32, #tpu.memory_space<vmem>>, %arg16: memref<8x64xf32, #tpu.memory_space<vmem>>, %arg17: memref<64x64xf32, #tpu.memory_space<vmem>>, %arg18: memref<64x64xf32, #tpu.memory_space<vmem>>, %arg19: memref<64x64xf32, #tpu.memory_space<vmem>>, %arg20: memref<64x64xf32, #tpu.memory_space<vmem>>, %arg21: memref<8x128xf32, #tpu.memory_space<vmem>>) attributes {dimension_semantics = [#tpu.dimension_semantics<parallel>], iteration_bounds = array<i64: 1>, scalar_prefetch = 0 : i64, scratch_operands = 0 : i64, tpu.core_type = #tpu.core_type<tc>, window_params = [{transform_indices = @transform_0, window_bounds = array<i64: 8, 16>}, {transform_indices = @transform_1, window_bounds = array<i64: 8, 32>}, {transform_indices = @transform_2, window_bounds = array<i64: 8, 64>}, {pipeline_mode = #tpu.pipeline_mode<synchronous>, transform_indices = @transform_3, window_bounds = array<i64: 16, 32>}, {pipeline_mode = #tpu.pipeline_mode<synchronous>, transform_indices = @transform_4, window_bounds = array<i64: 32, 32>}, {pipeline_mode = #tpu.pipeline_mode<synchronous>, transform_indices = @transform_5, window_bounds = array<i64: 64, 32>}, {pipeline_mode = #tpu.pipeline_mode<synchronous>, transform_indices = @transform_6, window_bounds = array<i64: 1, 32>}, {pipeline_mode = #tpu.pipeline_mode<synchronous>, transform_indices = @transform_7, window_bounds = array<i64: 32, 8>}, {pipeline_mode = #tpu.pipeline_mode<synchronous>, transform_indices = @transform_8, window_bounds = array<i64: 64, 8>}, {pipeline_mode = #tpu.pipeline_mode<synchronous>, transform_indices = @transform_9, window_bounds = array<i64: 1, 8>}, {pipeline_mode = #tpu.pipeline_mode<synchronous>, transform_indices = @transform_10, window_bounds = array<i64: 32, 64>}, {pipeline_mode = #tpu.pipeline_mode<synchronous>, transform_indices = @transform_11, window_bounds = array<i64: 64, 64>}, {pipeline_mode = #tpu.pipeline_mode<synchronous>, transform_indices = @transform_12, window_bounds = array<i64: 1, 64>}, {pipeline_mode = #tpu.pipeline_mode<synchronous>, transform_indices = @transform_13, window_bounds = array<i64: 64, 8>}, {pipeline_mode = #tpu.pipeline_mode<synchronous>, transform_indices = @transform_14, window_bounds = array<i64: 64, 8>}, {pipeline_mode = #tpu.pipeline_mode<synchronous>, transform_indices = @transform_15, window_bounds = array<i64: 8, 64>}, {pipeline_mode = #tpu.pipeline_mode<synchronous>, transform_indices = @transform_16, window_bounds = array<i64: 64, 64>}, {pipeline_mode = #tpu.pipeline_mode<synchronous>, transform_indices = @transform_17, window_bounds = array<i64: 64, 64>}, {pipeline_mode = #tpu.pipeline_mode<synchronous>, transform_indices = @transform_18, window_bounds = array<i64: 64, 64>}, {pipeline_mode = #tpu.pipeline_mode<synchronous>, transform_indices = @transform_19, window_bounds = array<i64: 64, 64>}, {transform_indices = @transform_20, window_bounds = array<i64: 8, 128>}]} {
    %c0 = arith.constant 0 : index
    %c0_0 = arith.constant 0 : index
    %0 = vector.load %arg1[%c0, %c0_0] : memref<8x16xf32, #tpu.memory_space<vmem>>, vector<8x16xf32>
    %c0_1 = arith.constant 0 : index
    %c0_2 = arith.constant 0 : index
    %1 = vector.load %arg2[%c0_1, %c0_2] : memref<8x32xf32, #tpu.memory_space<vmem>>, vector<8x32xf32>
    %c0_3 = arith.constant 0 : index
    %c0_4 = arith.constant 0 : index
    %2 = vector.load %arg3[%c0_3, %c0_4] : memref<8x64xf32, #tpu.memory_space<vmem>>, vector<8x64xf32>
    %c0_5 = arith.constant 0 : index
    %c0_6 = arith.constant 0 : index
    %3 = vector.load %arg4[%c0_5, %c0_6] : memref<16x32xf32, #tpu.memory_space<vmem>>, vector<16x32xf32>
    %cst = arith.constant dense<0.000000e+00> : vector<8x32xf32>
    %4 = tpu.matmul %0, %3, %cst {dimension_numbers = #tpu.dot_dimension_numbers<[1], [0], [0], [1], [0, 0, 1, 1], [], []>} : vector<8x16xf32>, vector<16x32xf32>, vector<8x32xf32> -> vector<8x32xf32>
    %c0_7 = arith.constant 0 : index
    %c0_8 = arith.constant 0 : index
    %5 = vector.load %arg5[%c0_7, %c0_8] : memref<32x32xf32, #tpu.memory_space<vmem>>, vector<32x32xf32>
    %cst_9 = arith.constant dense<0.000000e+00> : vector<8x32xf32>
    %6 = tpu.matmul %1, %5, %cst_9 {dimension_numbers = #tpu.dot_dimension_numbers<[1], [0], [0], [1], [0, 0, 1, 1], [], []>} : vector<8x32xf32>, vector<32x32xf32>, vector<8x32xf32> -> vector<8x32xf32>
    %7 = arith.addf %4, %6 : vector<8x32xf32>
    %c0_10 = arith.constant 0 : index
    %c0_11 = arith.constant 0 : index
    %8 = vector.load %arg6[%c0_10, %c0_11] : memref<64x32xf32, #tpu.memory_space<vmem>>, vector<64x32xf32>
    %cst_12 = arith.constant dense<0.000000e+00> : vector<8x32xf32>
    %9 = tpu.matmul %2, %8, %cst_12 {dimension_numbers = #tpu.dot_dimension_numbers<[1], [0], [0], [1], [0, 0, 1, 1], [], []>} : vector<8x64xf32>, vector<64x32xf32>, vector<8x32xf32> -> vector<8x32xf32>
    %10 = arith.addf %7, %9 : vector<8x32xf32>
    %c0_13 = arith.constant 0 : index
    %c0_14 = arith.constant 0 : index
    %11 = vector.load %arg7[%c0_13, %c0_14] : memref<1x32xf32, #tpu.memory_space<vmem>>, vector<1x32xf32>
    %12 = vector.broadcast %11 : vector<1x32xf32> to vector<8x32xf32>
    %13 = arith.addf %10, %12 : vector<8x32xf32>
    %cst_15 = arith.constant 0.000000e+00 : f32
    %14 = vector.broadcast %cst_15 : f32 to vector<8x32xf32>
    %15 = arith.maximumf %13, %14 : vector<8x32xf32>
    %c0_16 = arith.constant 0 : index
    %c0_17 = arith.constant 0 : index
    %16 = vector.load %arg8[%c0_16, %c0_17] : memref<32x8xf32, #tpu.memory_space<vmem>>, vector<32x8xf32>
    %cst_18 = arith.constant dense<0.000000e+00> : vector<8x8xf32>
    %17 = tpu.matmul %15, %16, %cst_18 {dimension_numbers = #tpu.dot_dimension_numbers<[1], [0], [0], [1], [0, 0, 1, 1], [], []>} : vector<8x32xf32>, vector<32x8xf32>, vector<8x8xf32> -> vector<8x8xf32>
    %c0_19 = arith.constant 0 : index
    %c0_20 = arith.constant 0 : index
    %18 = vector.load %arg9[%c0_19, %c0_20] : memref<64x8xf32, #tpu.memory_space<vmem>>, vector<64x8xf32>
    %cst_21 = arith.constant dense<0.000000e+00> : vector<8x8xf32>
    %19 = tpu.matmul %2, %18, %cst_21 {dimension_numbers = #tpu.dot_dimension_numbers<[1], [0], [0], [1], [0, 0, 1, 1], [], []>} : vector<8x64xf32>, vector<64x8xf32>, vector<8x8xf32> -> vector<8x8xf32>
    %20 = arith.addf %17, %19 : vector<8x8xf32>
    %c0_22 = arith.constant 0 : index
    %c0_23 = arith.constant 0 : index
    %21 = vector.load %arg10[%c0_22, %c0_23] : memref<1x8xf32, #tpu.memory_space<vmem>>, vector<1x8xf32>
    %22 = vector.broadcast %21 : vector<1x8xf32> to vector<8x8xf32>
    %23 = arith.addf %20, %22 : vector<8x8xf32>
    %c0_24 = arith.constant 0 : index
    %c0_25 = arith.constant 0 : index
    %24 = vector.load %arg11[%c0_24, %c0_25] : memref<32x64xf32, #tpu.memory_space<vmem>>, vector<32x64xf32>
    %cst_26 = arith.constant dense<0.000000e+00> : vector<8x64xf32>
    %25 = tpu.matmul %15, %24, %cst_26 {dimension_numbers = #tpu.dot_dimension_numbers<[1], [0], [0], [1], [0, 0, 1, 1], [], []>} : vector<8x32xf32>, vector<32x64xf32>, vector<8x64xf32> -> vector<8x64xf32>
    %c0_27 = arith.constant 0 : index
    %c0_28 = arith.constant 0 : index
    %26 = vector.load %arg12[%c0_27, %c0_28] : memref<64x64xf32, #tpu.memory_space<vmem>>, vector<64x64xf32>
    %cst_29 = arith.constant dense<0.000000e+00> : vector<8x64xf32>
    %27 = tpu.matmul %2, %26, %cst_29 {dimension_numbers = #tpu.dot_dimension_numbers<[1], [0], [0], [1], [0, 0, 1, 1], [], []>} : vector<8x64xf32>, vector<64x64xf32>, vector<8x64xf32> -> vector<8x64xf32>
    %28 = arith.addf %25, %27 : vector<8x64xf32>
    %c0_30 = arith.constant 0 : index
    %c0_31 = arith.constant 0 : index
    %29 = vector.load %arg13[%c0_30, %c0_31] : memref<1x64xf32, #tpu.memory_space<vmem>>, vector<1x64xf32>
    %30 = vector.broadcast %29 : vector<1x64xf32> to vector<8x64xf32>
    %31 = arith.addf %28, %30 : vector<8x64xf32>
    %32 = math.absf %31 : vector<8x64xf32>
    %33 = arith.mulf %32, %32 : vector<8x64xf32>
    %34 = arith.mulf %33, %33 : vector<8x64xf32>
    %35 = arith.mulf %34, %32 : vector<8x64xf32>
    %c0_32 = arith.constant 0 : index
    %c0_33 = arith.constant 0 : index
    %36 = vector.load %arg14[%c0_32, %c0_33] : memref<64x8xf32, #tpu.memory_space<vmem>>, vector<64x8xf32>
    %cst_34 = arith.constant dense<0.000000e+00> : vector<8x8xf32>
    %37 = tpu.matmul %35, %36, %cst_34 {dimension_numbers = #tpu.dot_dimension_numbers<[1], [0], [0], [1], [0, 0, 1, 1], [], []>} : vector<8x64xf32>, vector<64x8xf32>, vector<8x8xf32> -> vector<8x8xf32>
    %c0_35 = arith.constant 0 : index
    %c0_36 = arith.constant 0 : index
    %38 = vector.load %arg15[%c0_35, %c0_36] : memref<64x8xf32, #tpu.memory_space<vmem>>, vector<64x8xf32>
    %cst_37 = arith.constant dense<0.000000e+00> : vector<8x8xf32>
    %39 = tpu.matmul %35, %38, %cst_37 {dimension_numbers = #tpu.dot_dimension_numbers<[1], [0], [0], [1], [0, 0, 1, 1], [], []>} : vector<8x64xf32>, vector<64x8xf32>, vector<8x8xf32> -> vector<8x8xf32>
    %40 = arith.mulf %37, %39 : vector<8x8xf32>
    %cst_38 = arith.constant 0.000000e+00 : f32
    %41 = vector.broadcast %cst_38 : f32 to vector<8x8xf32>
    %42 = arith.cmpf ogt, %40, %41 : vector<8x8xf32>
    %cst_39 = arith.constant 1.401300e-45 : f32
    %43 = vector.broadcast %cst_39 : f32 to vector<8x8xf32>
    %44 = arith.maximumf %40, %43 : vector<8x8xf32>
    %45 = math.log %44 : vector<8x8xf32>
    %cst_40 = arith.constant -2.000000e-01 : f32
    %46 = vector.broadcast %cst_40 : f32 to vector<8x8xf32>
    %47 = arith.mulf %46, %45 : vector<8x8xf32>
    %48 = math.exp %47 : vector<8x8xf32>
    %cst_41 = arith.constant 9.99999995E+11 : f32
    %49 = vector.broadcast %cst_41 : f32 to vector<8x8xf32>
    %50 = arith.select %42, %48, %49 : vector<8x8xi1>, vector<8x8xf32>
    %51 = arith.mulf %23, %50 : vector<8x8xf32>
    %c0_42 = arith.constant 0 : index
    %c0_43 = arith.constant 0 : index
    %52 = vector.load %arg16[%c0_42, %c0_43] : memref<8x64xf32, #tpu.memory_space<vmem>>, vector<8x64xf32>
    %cst_44 = arith.constant dense<0.000000e+00> : vector<8x64xf32>
    %53 = tpu.matmul %51, %52, %cst_44 {dimension_numbers = #tpu.dot_dimension_numbers<[1], [0], [0], [1], [0, 0, 1, 1], [], []>} : vector<8x8xf32>, vector<8x64xf32>, vector<8x64xf32> -> vector<8x64xf32>
    %54 = arith.mulf %53, %31 : vector<8x64xf32>
    %c0_45 = arith.constant 0 : index
    %c0_46 = arith.constant 0 : index
    %55 = vector.load %arg17[%c0_45, %c0_46] : memref<64x64xf32, #tpu.memory_space<vmem>>, vector<64x64xf32>
    %cst_47 = arith.constant dense<0.000000e+00> : vector<8x64xf32>
    %56 = tpu.matmul %54, %55, %cst_47 {dimension_numbers = #tpu.dot_dimension_numbers<[1], [0], [0], [1], [0, 0, 1, 1], [], []>} : vector<8x64xf32>, vector<64x64xf32>, vector<8x64xf32> -> vector<8x64xf32>
    %c0_48 = arith.constant 0 : index
    %c0_49 = arith.constant 0 : index
    %57 = vector.load %arg18[%c0_48, %c0_49] : memref<64x64xf32, #tpu.memory_space<vmem>>, vector<64x64xf32>
    %cst_50 = arith.constant dense<0.000000e+00> : vector<8x64xf32>
    %58 = tpu.matmul %31, %57, %cst_50 {dimension_numbers = #tpu.dot_dimension_numbers<[1], [0], [0], [1], [0, 0, 1, 1], [], []>} : vector<8x64xf32>, vector<64x64xf32>, vector<8x64xf32> -> vector<8x64xf32>
    %c0_51 = arith.constant 0 : index
    %c0_52 = arith.constant 0 : index
    %59 = vector.load %arg19[%c0_51, %c0_52] : memref<64x64xf32, #tpu.memory_space<vmem>>, vector<64x64xf32>
    %cst_53 = arith.constant dense<0.000000e+00> : vector<8x64xf32>
    %60 = tpu.matmul %54, %59, %cst_53 {dimension_numbers = #tpu.dot_dimension_numbers<[1], [0], [0], [1], [0, 0, 1, 1], [], []>} : vector<8x64xf32>, vector<64x64xf32>, vector<8x64xf32> -> vector<8x64xf32>
    %c0_54 = arith.constant 0 : index
    %c0_55 = arith.constant 0 : index
    %61 = vector.load %arg20[%c0_54, %c0_55] : memref<64x64xf32, #tpu.memory_space<vmem>>, vector<64x64xf32>
    %cst_56 = arith.constant dense<0.000000e+00> : vector<8x64xf32>
    %62 = tpu.matmul %31, %61, %cst_56 {dimension_numbers = #tpu.dot_dimension_numbers<[1], [0], [0], [1], [0, 0, 1, 1], [], []>} : vector<8x64xf32>, vector<64x64xf32>, vector<8x64xf32> -> vector<8x64xf32>
    %63 = arith.mulf %56, %58 : vector<8x64xf32>
    %64 = arith.addf %2, %63 : vector<8x64xf32>
    %65 = arith.mulf %60, %62 : vector<8x64xf32>
    %66 = arith.addf %64, %65 : vector<8x64xf32>
    %67 = tpu.concatenate %15, %66 in 1 : vector<8x32xf32>, vector<8x64xf32> -> vector<8x96xf32>
    %cst_57 = arith.constant 0.000000e+00 : f32
    %68 = vector.broadcast %cst_57 : f32 to vector<8x32xf32>
    %69 = tpu.concatenate %67, %68 in 1 : vector<8x96xf32>, vector<8x32xf32> -> vector<8x128xf32>
    %c0_58 = arith.constant 0 : index
    %c0_59 = arith.constant 0 : index
    %70 = vector.load %arg21[%c0_58, %c0_59] : memref<8x128xf32, #tpu.memory_space<vmem>>, vector<8x128xf32>
    tpu.vector_store %arg21[%c0_58, %c0_59], %69 {strides = array<i32>} : memref<8x128xf32, #tpu.memory_space<vmem>>, vector<8x128xf32>,
    return
  }
  func.func @transform_0(%arg0: i32) -> (i32, i32) {
    %c0_i32 = arith.constant 0 : i32
    %c0_i32_0 = arith.constant 0 : i32
    return %arg0, %c0_i32 : i32, i32
  }
  func.func @transform_1(%arg0: i32) -> (i32, i32) {
    %c0_i32 = arith.constant 0 : i32
    %c0_i32_0 = arith.constant 0 : i32
    return %arg0, %c0_i32 : i32, i32
  }
  func.func @transform_2(%arg0: i32) -> (i32, i32) {
    %c0_i32 = arith.constant 0 : i32
    %c0_i32_0 = arith.constant 0 : i32
    return %arg0, %c0_i32 : i32, i32
  }
  func.func @transform_3(%arg0: i32) -> (i32, i32) {
    %c0_i32 = arith.constant 0 : i32
    %c0_i32_0 = arith.constant 0 : i32
    %c0_i32_1 = arith.constant 0 : i32
    return %c0_i32, %c0_i32_0 : i32, i32
  }
  func.func @transform_4(%arg0: i32) -> (i32, i32) {
    %c0_i32 = arith.constant 0 : i32
    %c0_i32_0 = arith.constant 0 : i32
    %c0_i32_1 = arith.constant 0 : i32
    return %c0_i32, %c0_i32_0 : i32, i32
  }
  func.func @transform_5(%arg0: i32) -> (i32, i32) {
    %c0_i32 = arith.constant 0 : i32
    %c0_i32_0 = arith.constant 0 : i32
    %c0_i32_1 = arith.constant 0 : i32
    return %c0_i32, %c0_i32_0 : i32, i32
  }
  func.func @transform_6(%arg0: i32) -> (i32, i32) {
    %c0_i32 = arith.constant 0 : i32
    %c0_i32_0 = arith.constant 0 : i32
    %c0_i32_1 = arith.constant 0 : i32
    return %c0_i32, %c0_i32_0 : i32, i32
  }
  func.func @transform_7(%arg0: i32) -> (i32, i32) {
    %c0_i32 = arith.constant 0 : i32
    %c0_i32_0 = arith.constant 0 : i32
    %c0_i32_1 = arith.constant 0 : i32
    return %c0_i32, %c0_i32_0 : i32, i32
  }
  func.func @transform_8(%arg0: i32) -> (i32, i32) {
    %c0_i32 = arith.constant 0 : i32
    %c0_i32_0 = arith.constant 0 : i32
    %c0_i32_1 = arith.constant 0 : i32
    return %c0_i32, %c0_i32_0 : i32, i32
  }
  func.func @transform_9(%arg0: i32) -> (i32, i32) {
    %c0_i32 = arith.constant 0 : i32
    %c0_i32_0 = arith.constant 0 : i32
    %c0_i32_1 = arith.constant 0 : i32
    return %c0_i32, %c0_i32_0 : i32, i32
  }
  func.func @transform_10(%arg0: i32) -> (i32, i32) {
    %c0_i32 = arith.constant 0 : i32
    %c0_i32_0 = arith.constant 0 : i32
    %c0_i32_1 = arith.constant 0 : i32
    return %c0_i32, %c0_i32_0 : i32, i32
  }
  func.func @transform_11(%arg0: i32) -> (i32, i32) {
    %c0_i32 = arith.constant 0 : i32
    %c0_i32_0 = arith.constant 0 : i32
    %c0_i32_1 = arith.constant 0 : i32
    return %c0_i32, %c0_i32_0 : i32, i32
  }
  func.func @transform_12(%arg0: i32) -> (i32, i32) {
    %c0_i32 = arith.constant 0 : i32
    %c0_i32_0 = arith.constant 0 : i32
    %c0_i32_1 = arith.constant 0 : i32
    return %c0_i32, %c0_i32_0 : i32, i32
  }
  func.func @transform_13(%arg0: i32) -> (i32, i32) {
    %c0_i32 = arith.constant 0 : i32
    %c0_i32_0 = arith.constant 0 : i32
    %c0_i32_1 = arith.constant 0 : i32
    return %c0_i32, %c0_i32_0 : i32, i32
  }
  func.func @transform_14(%arg0: i32) -> (i32, i32) {
    %c0_i32 = arith.constant 0 : i32
    %c0_i32_0 = arith.constant 0 : i32
    %c0_i32_1 = arith.constant 0 : i32
    return %c0_i32, %c0_i32_0 : i32, i32
  }
  func.func @transform_15(%arg0: i32) -> (i32, i32) {
    %c0_i32 = arith.constant 0 : i32
    %c0_i32_0 = arith.constant 0 : i32
    %c0_i32_1 = arith.constant 0 : i32
    return %c0_i32, %c0_i32_0 : i32, i32
  }
  func.func @transform_16(%arg0: i32) -> (i32, i32) {
    %c0_i32 = arith.constant 0 : i32
    %c0_i32_0 = arith.constant 0 : i32
    %c0_i32_1 = arith.constant 0 : i32
    return %c0_i32, %c0_i32_0 : i32, i32
  }
  func.func @transform_17(%arg0: i32) -> (i32, i32) {
    %c0_i32 = arith.constant 0 : i32
    %c0_i32_0 = arith.constant 0 : i32
    %c0_i32_1 = arith.constant 0 : i32
    return %c0_i32, %c0_i32_0 : i32, i32
  }
  func.func @transform_18(%arg0: i32) -> (i32, i32) {
    %c0_i32 = arith.constant 0 : i32
    %c0_i32_0 = arith.constant 0 : i32
    %c0_i32_1 = arith.constant 0 : i32
    return %c0_i32, %c0_i32_0 : i32, i32
  }
  func.func @transform_19(%arg0: i32) -> (i32, i32) {
    %c0_i32 = arith.constant 0 : i32
    %c0_i32_0 = arith.constant 0 : i32
    %c0_i32_1 = arith.constant 0 : i32
    return %c0_i32, %c0_i32_0 : i32, i32
  }
  func.func @transform_20(%arg0: i32) -> (i32, i32) {
    %c0_i32 = arith.constant 0 : i32
    %c0_i32_0 = arith.constant 0 : i32
    return %arg0, %c0_i32 : i32, i32
  }
}

</mosaic_0001>

<bundles_post_ra>
// kernel: tpu_custom_call.1
= control target key start
LH: loop header
LB: loop body
LE: loop exit
PB: predicated region body
PF: predicated region fallthrough
CT: control target
= control target key end

     0   :  { %s2570_s0 = inlined_call_operand.hbm [shape: f32[8,16], index: 0, kind: input, shape index: {}]   ;;  %s2571_s1 = inlined_call_operand.hbm [shape: f32[8,32], index: 1, kind: input, shape index: {}]   ;;  %s2572_s2 = inlined_call_operand.hbm [shape: f32[8,64], index: 2, kind: input, shape index: {}]   ;;  %s2573_s3 = inlined_call_operand.hbm [shape: f32[16,32], index: 3, kind: input, shape index: {}]   ;;  %s2574_s4 = inlined_call_operand.hbm [shape: f32[32,32], index: 4, kind: input, shape index: {}]   ;;  %s2575_s5 = inlined_call_operand.vmem [shape: f32[64,32], index: 5, kind: input, shape index: {}]   ;;  %s2576_s6 = inlined_call_operand.vmem [shape: f32[1,32], index: 6, kind: input, shape index: {}]   ;;  %s2577_s7 = inlined_call_operand.vmem [shape: f32[32,8], index: 7, kind: input, shape index: {}]   ;;  %s2578_s8 = inlined_call_operand.vmem [shape: f32[64,8], index: 8, kind: input, shape index: {}]   ;;  %s2579_s9 = inlined_call_operand.hbm [shape: f32[1,8], index: 9, kind: input, shape index: {}]   ;;  %s2580_s10 = inlined_call_operand.vmem [shape: f32[32,64], index: 10, kind: input, shape index: {}]   ;;  %s2581_s11 = inlined_call_operand.vmem [shape: f32[64,64], index: 11, kind: input, shape index: {}]   ;;  %s2582_s12 = inlined_call_operand.hbm [shape: f32[1,64], index: 12, kind: input, shape index: {}]   ;;  %s2583_s13 = inlined_call_operand.vmem [shape: f32[64,8], index: 13, kind: input, shape index: {}]   ;;  %s2584_s14 = inlined_call_operand.vmem [shape: f32[64,8], index: 14, kind: input, shape index: {}]   ;;  %s2585_s15 = inlined_call_operand.vmem [shape: f32[8,64], index: 15, kind: input, shape index: {}]   ;;  %s2586_s16 = inlined_call_operand.vmem [shape: f32[64,64], index: 16, kind: input, shape index: {}]   ;;  %s2587_s17 = inlined_call_operand.vmem [shape: f32[64,64], index: 17, kind: input, shape index: {}]   ;;  %s2588_s18 = inlined_call_operand.vmem [shape: f32[64,64], index: 18, kind: input, shape index: {}]   ;;  %s2589_s19 = inlined_call_operand.vmem [shape: f32[64,64], index: 19, kind: input, shape index: {}]   ;;  %s2590_s20 = inlined_call_operand.hbm [shape: f32[8,128], index: 20, kind: output, shape index: {}]  }
   0x1   :  { %2598 = sst [smem:[#allocation20_spill]] %s2570_s0 }
   0x2   :  { %2599 = sst [smem:[#allocation21_spill]] %s2571_s1 }
   0x3   :  { %2600 = sst [smem:[#allocation22_spill]] %s2572_s2 }
   0x4   :  { %2601 = sst [smem:[#allocation23_spill]] %s2573_s3 }
   0x5   :  { %2602 = sst [smem:[#allocation24_spill]] %s2574_s4 }
   0x6   :  { %2603 = sst [smem:[#allocation25_spill]] %s2588_s18 }
   0x7   :  { %2604 = sst [smem:[#allocation26_spill]] %s2590_s20 }
   0x8   :  { %25 = vsyncpa [#allocation3], 0 }
   0x9   :  { %26 = vsyncpa [#allocation6], 0 }
   0xa   :  { %27 = vsyncpa [#allocation9], 0 }
   0xb   :  { %28 = vsyncpa [#allocation12], 0 }
   0xc   :  { %29 = vsyncpa [#allocation4], 0  ;;  %s1987_s1 = smov [#allocation5]   ;;  %s1988_s23 = smov [#allocation8]  }
   0xd   :  { %s46_s22 = sshll.u32 %s1987_s1, 4  ;;  %s65_s24 = sshll.u32 %s1988_s23, 4  ;;  %s47_s22 = int_to_ptr.vmem [resolvable:$true] %s46_s22  ;;  %s2106_s24 = int_to_ptr.vmem [resolvable:$true] %s65_s24 }
   0xe   :  { %s2605_s3 = sld [smem:[#allocation21_spill]] }
  0x14   :  { %s1801_s26 = scalar_lea.hbm %s2605_s3, 128 }
  0x15   :  { %p1802_p0 = scmp.ne.s32.totalorder %s2605_s3, %s1801_s26  ;;  %p1805_p1 = scmp.lt.u32.totalorder %s1801_s26, %s2605_s3 }
  0x17   :  { %p1807_p2 = pnand %p1805_p1, %p1802_p0 }
  0x19   :  { %1810 = shalt.err (!%p1807_p2)
}
  0x1a   :  { %s1811_s30 = scalar_lea.vmem %s47_s22, 128  ;;  %p1816_p4 = scmp.lt.s32.totalorder %s47_s22, %s47_s22 }
  0x1b   :  { %p1812_p3 = scmp.ne.s32.totalorder %s47_s22, %s1811_s30  ;;  %p1817_p5 = scmp.lt.s32.totalorder %s1811_s30, %s1811_s30 }
  0x1d   :  { %p1818_p6 = por %p1817_p5, %p1816_p4 }
  0x1f   :  { %p1819_p7 = pnand %p1818_p6, %p1812_p3 }
  0x21   :  { %1822 = shalt.err (!%p1819_p7)
}
  0x22   :  { %49 = dma.hbm_to_vmem [thread:$0]  %s2605_s3, 128, %s47_s22, [#allocation6]  }
  0x23   :  { %s2606_s2 = sld [smem:[#allocation23_spill]] }
  0x29   :  { %s1823_s25 = scalar_lea.hbm %s2606_s2, 256 }
  0x2a   :  { %p1824_p8 = scmp.ne.s32.totalorder %s2606_s2, %s1823_s25  ;;  %p1827_p9 = scmp.lt.u32.totalorder %s1823_s25, %s2606_s2 }
  0x2c   :  { %p1829_p10 = pnand %p1827_p9, %p1824_p8 }
  0x2e   :  { %1832 = shalt.err (!%p1829_p10)
}
  0x2f   :  { %s1833_s29 = scalar_lea.vmem %s2106_s24, 256  ;;  %p1838_p12 = scmp.lt.s32.totalorder %s2106_s24, %s2106_s24 }
  0x30   :  { %p1834_p11 = scmp.ne.s32.totalorder %s2106_s24, %s1833_s29  ;;  %p1839_p13 = scmp.lt.s32.totalorder %s1833_s29, %s1833_s29 }
  0x32   :  { %p1840_p0 = por %p1839_p13, %p1838_p12 }
  0x34   :  { %p1841_p1 = pnand %p1840_p0, %p1834_p11 }
  0x36   :  { %1844 = shalt.err (!%p1841_p1)
}
  0x37   :  { %s1989_s22 = smov 128   ;;  %s1990_s3 = smov 8  }
  0x38   :  { %71 = dma.hbm_to_vmem [thread:$0]  %s2606_s2, 256, %s2106_s24, [#allocation9], %s1989_s22, %s1989_s22, %s1990_s3  }
  0x39   :  { %s1991_s21 = smov [#allocation11]   ;;  %s1992_s23 = smov [#allocation2]  }
  0x3a   :  { %s98_s1 = sshll.u32 %s1991_s21, 4  ;;  %s36_s25 = sshll.u32 %s1992_s23, 4  ;;  %s99_s1 = int_to_ptr.vmem [resolvable:$true] %s98_s1  ;;  %s37_s25 = int_to_ptr.vmem [resolvable:$true] %s36_s25 }
  0x3b   :  { %s1845_s26 = scalar_lea.hbm %s2579_s9, 16 }
  0x3c   :  { %p1846_p2 = scmp.ne.s32.totalorder %s2579_s9, %s1845_s26  ;;  %p1849_p3 = scmp.lt.u32.totalorder %s1845_s26, %s2579_s9 }
  0x3e   :  { %p1851_p4 = pnand %p1849_p3, %p1846_p2 }
  0x40   :  { %1854 = shalt.err (!%p1851_p4)
}
  0x41   :  { %s1855_s24 = scalar_lea.vmem %s99_s1, 16  ;;  %s1859_s2 = scalar_lea.vmem %s99_s1, 32 }
  0x42   :  { %p1856_p5 = scmp.ne.s32.totalorder %s99_s1, %s1855_s24  ;;  %p1860_p6 = scmp.lt.s32.totalorder %s99_s1, %s99_s1 }
  0x43   :  { %p1861_p7 = scmp.lt.s32.totalorder %s1859_s2, %s1855_s24 }
  0x45   :  { %p1862_p8 = por %p1861_p7, %p1860_p6 }
  0x47   :  { %p1863_p9 = pnand %p1862_p8, %p1856_p5 }
  0x49   :  { %1866 = shalt.err (!%p1863_p9)
}
  0x4a   :  { %101 = dma.hbm_to_vmem [thread:$0]  %s2579_s9, 16, %s99_s1, [#allocation12]  }
  0x4b   :  { %s2607_s27 = sld [smem:[#allocation20_spill]] }
  0x51   :  { %s1867_s28 = scalar_lea.hbm %s2607_s27, 128 }
  0x52   :  { %p1868_p10 = scmp.ne.s32.totalorder %s2607_s27, %s1867_s28  ;;  %p1871_p11 = scmp.lt.u32.totalorder %s1867_s28, %s2607_s27 }
  0x54   :  { %p1873_p12 = pnand %p1871_p11, %p1868_p10 }
  0x56   :  { %1876 = shalt.err (!%p1873_p12)
}
  0x57   :  { %s1877_s29 = scalar_lea.vmem %s37_s25, 128  ;;  %p1882_p0 = scmp.lt.s32.totalorder %s37_s25, %s37_s25 }
  0x58   :  { %p1878_p13 = scmp.ne.s32.totalorder %s37_s25, %s1877_s29  ;;  %p1883_p1 = scmp.lt.s32.totalorder %s1877_s29, %s1877_s29 }
  0x5a   :  { %p1884_p2 = por %p1883_p1, %p1882_p0 }
  0x5c   :  { %p1885_p3 = pnand %p1884_p2, %p1878_p13 }
  0x5e   :  { %1888 = shalt.err (!%p1885_p3)
}
  0x5f   :  { %39 = dma.hbm_to_vmem [thread:$0]  %s2607_s27, 128, %s37_s25, [#allocation3]  }
  0x60   :  { %s1993_s24 = smov [#allocation7]   ;;  %s1994_s30 = smov [#allocation10]  }
  0x61   :  { %s56_s2 = sshll.u32 %s1993_s24, 4  ;;  %s77_s0 = sshll.u32 %s1994_s30, 4  ;;  %s57_s2 = int_to_ptr.vmem [resolvable:$true] %s56_s2  ;;  %s2164_s0 = int_to_ptr.vmem [resolvable:$true] %s77_s0 }
  0x62   :  { %s2608_s28 = sld [smem:[#allocation22_spill]] }
  0x68   :  { %s1889_s18 = scalar_lea.hbm %s2608_s28, 128 }
  0x69   :  { %p1890_p4 = scmp.ne.s32.totalorder %s2608_s28, %s1889_s18  ;;  %p1893_p5 = scmp.lt.u32.totalorder %s1889_s18, %s2608_s28 }
  0x6b   :  { %p1895_p6 = pnand %p1893_p5, %p1890_p4 }
  0x6d   :  { %1898 = shalt.err (!%p1895_p6)
}
  0x6e   :  { %s1899_s25 = scalar_lea.vmem %s57_s2, 128  ;;  %p1904_p8 = scmp.lt.s32.totalorder %s57_s2, %s57_s2 }
  0x6f   :  { %p1900_p7 = scmp.ne.s32.totalorder %s57_s2, %s1899_s25  ;;  %p1905_p9 = scmp.lt.s32.totalorder %s1899_s25, %s1899_s25 }
  0x71   :  { %p1906_p10 = por %p1905_p9, %p1904_p8 }
  0x73   :  { %p1907_p11 = pnand %p1906_p10, %p1900_p7 }
  0x75   :  { %1910 = shalt.err (!%p1907_p11)
}
  0x76   :  { %59 = dma.hbm_to_vmem [thread:$0]  %s2608_s28, 128, %s57_s2, [#allocation6]  }
  0x77   :  { %s2609_s30 = sld [smem:[#allocation24_spill]] }
  0x7d   :  { %s1911_s21 = scalar_lea.hbm %s2609_s30, 512 }
  0x7e   :  { %p1912_p12 = scmp.ne.s32.totalorder %s2609_s30, %s1911_s21  ;;  %p1915_p13 = scmp.lt.u32.totalorder %s1911_s21, %s2609_s30 }
  0x80   :  { %p1917_p0 = pnand %p1915_p13, %p1912_p12 }
  0x82   :  { %1920 = shalt.err (!%p1917_p0)
}
  0x83   :  { %s1921_s4 = scalar_lea.vmem %s2164_s0, 512  ;;  %p1926_p2 = scmp.lt.s32.totalorder %s2164_s0, %s2164_s0 }
  0x84   :  { %p1922_p1 = scmp.ne.s32.totalorder %s2164_s0, %s1921_s4  ;;  %p1927_p3 = scmp.lt.s32.totalorder %s1921_s4, %s1921_s4 }
  0x86   :  { %p1928_p4 = por %p1927_p3, %p1926_p2 }
  0x88   :  { %p1929_p5 = pnand %p1928_p4, %p1922_p1 }
  0x8a   :  { %1932 = shalt.err (!%p1929_p5)
}
  0x8b   :  { %83 = dma.hbm_to_vmem [thread:$0]  %s2609_s30, 512, %s2164_s0, [#allocation9], %s1989_s22, %s1989_s22, %s1990_s3  }
  0x8c   :  { %s1995_s29 = smov [#allocation13]   ;;  %s1933_s1 = scalar_lea.hbm %s2582_s12, 16 }
  0x8d   :  { %s112_s25 = sshll.u32 %s1995_s29, 4  ;;  %p1934_p6 = scmp.ne.s32.totalorder %s2582_s12, %s1933_s1  ;;  %s113_s25 = int_to_ptr.vmem [resolvable:$true] %s112_s25 }
  0x8e   :  { %p1937_p7 = scmp.lt.u32.totalorder %s1933_s1, %s2582_s12 }
  0x90   :  { %p1939_p8 = pnand %p1937_p7, %p1934_p6 }
  0x92   :  { %1942 = shalt.err (!%p1939_p8)
}
  0x93   :  { %s1943_s18 = scalar_lea.vmem %s113_s25, 16  ;;  %s1947_s22 = scalar_lea.vmem %s113_s25, 32 }
  0x94   :  { %p1944_p9 = scmp.ne.s32.totalorder %s113_s25, %s1943_s18  ;;  %p1948_p10 = scmp.lt.s32.totalorder %s113_s25, %s113_s25 }
  0x95   :  { %p1949_p11 = scmp.lt.s32.totalorder %s1947_s22, %s1943_s18 }
  0x97   :  { %p1950_p12 = por %p1949_p11, %p1948_p10 }
  0x99   :  { %p1951_p13 = pnand %p1950_p12, %p1944_p9 }
  0x9b   :  { %1954 = shalt.err (!%p1951_p13)
}
  0x9c   :  { %115 = dma.hbm_to_vmem [thread:$0]  %s2582_s12, 16, %s113_s25, [#allocation12]  }
  0x9d   :  { %1977 = dma.done.wait [#allocation3], 128  }
  0x9e   :  { %1978 = vsyncadd [#allocation3], 4294967168 }
  0x9f   :  { %1979 = dma.done.wait [#allocation6], 256  }
  0xa0   :  { %1980 = vsyncadd [#allocation6], 4294967040 }
  0xa1   :  { %1981 = dma.done.wait [#allocation9], 768  }
  0xa2   :  { %1982 = vsyncadd [#allocation9], 4294966528 }
  0xa3   :  { %1983 = dma.done.wait [#allocation12], 32  }
  0xa4   :  { %1984 = vsyncadd [#allocation12], 4294967264  ;;  %v1996_v0 = vmov 0.0|0.0   ;;  %vm1997_vm0 = vmmov 0   ;;  %v1998_v1 = vmov 0.0   ;;  %v156_v2 = vld [vmem:[#allocation10] sm:$0xff] }
  0xa5   :  { %1654 = vmatprep.subr.bf16.mxu0 %v1996_v0  ;;  %1660 = vmatprep.subr.bf16.mxu1 %v1996_v0  ;;  %v157_v3 = vld [vmem:[#allocation10 + $0x8] sm:$0xff]  ;;  %v154_v4 = vld [vmem:[#allocation8] sm:$0xff]  ;;  %v155_v6 = vld [vmem:[#allocation8 + $0x8] sm:$0xff]  ;;  %vm234_vm1 = vcmask 130048   ;;  %vm160_vm2 = vcmask 261120   ;;  %vm316_vm3 = vcmask 523264  }
  0xa6   :  { %1453 = vmatprep.mubr.msk.f32.mxu1 %vm1997_vm0, %v1998_v1  ;;  %1446 = vmatprep.mubr.msk.f32.mxu0 %vm1997_vm0, %v1998_v1  ;;  %v1655_v5 = vpack.c.bf16 %v157_v3, %v156_v2  ;;  %v158_v7 = vld [vmem:[#allocation10 + $0x10] sm:$0xff]  ;;  %v1661_v8 = vpack.c.bf16 %v155_v6, %v154_v4  ;;  %v159_v9 = vld [vmem:[#allocation10 + $0x18] sm:$0xff]  ;;  %v309_v11 = vld [vmem:[%s2575_s5 + $0x8] sm:$0xff]  ;;  %vm897_vm5 = vcmask 64512   ;;  %s1999_s24 = smov 32   ;;  %s2000_s21 = smov [#allocation14]  }
  0xa7   :  { %v308_v10 = vld [vmem:[%s2575_s5] sm:$0xff]  ;;  %v1658_v12 = vpack.c.bf16 %v159_v9, %v158_v7  ;;  %v310_v15 = vld [vmem:[%s2575_s5 + $0x10] sm:$0xff]  ;;  %v311_v16 = vld [vmem:[%s2575_s5 + $0x18] sm:$0xff]  ;;  %s1308_s23 = sshll.u32 %s2000_s21, 4  ;;  %vm1299_vm6 = vcmask 785408   ;;  %s1309_s23 = int_to_ptr.vmem [resolvable:$true] %s1308_s23 }
  0xa8   :  { %1656 = vmatpush3.bf16.msra.mxu0 %v1655_v5  ;;  %1662 = vmatpush3.bf16.msra.mxu1 %v1661_v8  ;;  %v151_v13 = vld [vmem:[#allocation2] sm:$0xff]  ;;  %v1664_v14 = vpack.c.bf16 %v309_v11, %v308_v10  ;;  %v405_v18 = vld [vmem:[%s2578_s8 + $0x8] sm:$0xff]  ;;  %v1667_v21 = vpack.c.bf16 %v311_v16, %v310_v15  ;;  %v314_v25 = vld [vmem:[%s2575_s5 + $0x30] sm:$0xff]  ;;  %p1960_p1 = scmp.lt.s32.totalorder %s1309_s23, %s1309_s23 }
  0xa9   :  { %1657 = vmatprep.subr.bf16.mxu0 %v1996_v0  ;;  %1663 = vmatprep.subr.bf16.mxu1 %v1996_v0  ;;  %v404_v17 = vld [vmem:[%s2578_s8] sm:$0xff]  ;;  %v152_v19 = vld [vmem:[#allocation5] sm:$0xff]  ;;  %v315_v26 = vld [vmem:[%s2575_s5 + $0x38] sm:$0xff] }
  0xaa   :  { %v1676_v20 = vpack.c.bf16 %v405_v18, %v404_v17  ;;  %v312_v22 = vld [vmem:[%s2575_s5 + $0x20] sm:$0xff]  ;;  %v313_v23 = vld [vmem:[%s2575_s5 + $0x28] sm:$0xff]  ;;  %v1673_v27 = vpack.c.bf16 %v315_v26, %v314_v25  ;;  %v2258_v28 = vld [vmem:[#allocation7] sm:$0xff] }
  0xab   :  { %1454 = vmatmul.mubr.msk.f32.vlgmr.msra.gmra.mrb[0].mxu1 %vm234_vm1, %v151_v13  ;;  %v1670_v24 = vpack.c.bf16 %v313_v23, %v312_v22  ;;  %v406_v29 = vld [vmem:[%s2578_s8 + $0x10] sm:$0xff]  ;;  %v407_v30 = vld [vmem:[%s2578_s8 + $0x18] sm:$0xff]  ;;  %v408_v32 = vld [vmem:[%s2578_s8 + $0x20] sm:$0xff] }
  0xac   :  { %1659 = vmatpush3.bf16.msra.mxu0 %v1658_v12  ;;  %1665 = vmatpush3.bf16.msra.mxu1 %v1664_v14  ;;  %v1679_v31 = vpack.c.bf16 %v407_v30, %v406_v29  ;;  %v409_v33 = vld [vmem:[%s2578_s8 + $0x28] sm:$0xff]  ;;  %v410_v35 = vld [vmem:[%s2578_s8 + $0x30] sm:$0xff]  ;;  %v411_v36 = vld [vmem:[%s2578_s8 + $0x38] sm:$0xff] }
  0xad   :  { %1472 = vmatprep.mubr.msk.f32.mxu1 %vm1997_vm0, %v1998_v1  ;;  %1666 = vmatprep.subr.bf16.mxu1 %v1996_v0  ;;  %v1682_v34 = vpack.c.bf16 %v409_v33, %v408_v32  ;;  %v400_v37 = vld [vmem:[%s2577_s7] sm:$0xff]  ;;  %v401_v38 = vld [vmem:[%s2577_s7 + $0x8] sm:$0xff]  ;;  %v1685_v39 = vpack.c.bf16 %v411_v36, %v410_v35  ;;  %v569_v44 = vld [vmem:[%s2581_s11 + $0x10] sm:$0xff] }
  0xae   :  { %1675 = vmatprep.subr.bf16.mxu0 %v1996_v0  ;;  %v1688_v40 = vpack.c.bf16 %v401_v38, %v400_v37  ;;  %v567_v41 = vld [vmem:[%s2581_s11] sm:$0xff]  ;;  %v568_v42 = vld [vmem:[%s2581_s11 + $0x8] sm:$0xff]  ;;  %v570_v45 = vld [vmem:[%s2581_s11 + $0x18] sm:$0xff] }
  0xaf   :  { %1447 = vmatmul.mubr.msk.f32.vlgmr.msra.gmra.mrb[0].mxu0 %vm160_vm2, %v152_v19  ;;  %v1694_v43 = vpack.c.bf16 %v568_v42, %v567_v41  ;;  %v1697_v46 = vpack.c.bf16 %v570_v45, %v569_v44  ;;  %v402_v47 = vld [vmem:[%s2577_s7 + $0x10] sm:$0xff]  ;;  %v403_v48 = vld [vmem:[%s2577_s7 + $0x18] sm:$0xff]  ;;  %v571_v50 = vld [vmem:[%s2581_s11 + $0x20] sm:$0xff] }
  0xb0   :  { %1677 = vmatpush3.bf16.msra.mxu0 %v1676_v20  ;;  %1491 = vmatprep.mubr.msk.f32.mxu0 %vm1997_vm0, %v1998_v1  ;;  %v1691_v49 = vpack.c.bf16 %v403_v48, %v402_v47  ;;  %v572_v51 = vld [vmem:[%s2581_s11 + $0x28] sm:$0xff]  ;;  %v573_v53 = vld [vmem:[%s2581_s11 + $0x30] sm:$0xff]  ;;  %v574_v54 = vld [vmem:[%s2581_s11 + $0x38] sm:$0xff] }
  0xb1   :  { %1668 = vmatpush3.bf16.msra.mxu1 %v1667_v21  ;;  %1678 = vmatprep.subr.bf16.mxu0 %v1996_v0  ;;  %v1700_v52 = vpack.c.bf16 %v572_v51, %v571_v50  ;;  %v1703_v55 = vpack.c.bf16 %v574_v54, %v573_v53  ;;  %v1323_v62 = vld [vmem:[%s2576_s6] ss:$0 sm:$0xff]  ;;  %v564_v4 = vld [vmem:[%s2580_s10 + $0x8] sm:$0xff]  ;;  %v565_v8 = vld [vmem:[%s2580_s10 + $0x10] sm:$0xff] }
  0xb2   :  { %1669 = vmatprep.subr.bf16.mxu1 %v1996_v0  ;;  %v563_v3 = vld [vmem:[%s2580_s10] sm:$0xff]  ;;  %v566_v9 = vld [vmem:[%s2580_s10 + $0x18] sm:$0xff]  ;;  %v728_v14 = vld [vmem:[%s2583_s13 + $0x8] sm:$0xff]  ;;  %s2610_s10 = sld [smem:[#allocation25_spill]] }
  0xb3   :  { %v1706_v6 = vpack.c.bf16 %v564_v4, %v563_v3  ;;  %v1709_v10 = vpack.c.bf16 %v566_v9, %v565_v8  ;;  %v727_v13 = vld [vmem:[%s2583_s13] sm:$0xff]  ;;  %v809_v17 = vld [vmem:[%s2584_s14 + $0x8] sm:$0xff]  ;;  %v729_v20 = vld [vmem:[%s2583_s13 + $0x10] sm:$0xff] }
  0xb4   :  { %1680 = vmatpush3.bf16.msra.mxu0 %v1679_v31  ;;  %v808_v15 = vld [vmem:[%s2584_s14] sm:$0xff]  ;;  %v1712_v16 = vpack.c.bf16 %v728_v14, %v727_v13  ;;  %v730_v21 = vld [vmem:[%s2583_s13 + $0x18] sm:$0xff]  ;;  %v810_v22 = vld [vmem:[%s2584_s14 + $0x10] sm:$0xff] }
  0xb5   :  { %1671 = vmatpush3.bf16.msra.mxu1 %v1670_v24  ;;  %1681 = vmatprep.subr.bf16.mxu0 %v1996_v0  ;;  %v1724_v18 = vpack.c.bf16 %v809_v17, %v808_v15  ;;  %v1715_v24 = vpack.c.bf16 %v730_v21, %v729_v20  ;;  %v811_v25 = vld [vmem:[%s2584_s14 + $0x18] sm:$0xff]  ;;  %v732_v29 = vld [vmem:[%s2583_s13 + $0x28] sm:$0xff]  ;;  %v812_v30 = vld [vmem:[%s2584_s14 + $0x20] sm:$0xff] }
  0xb6   :  { %1672 = vmatprep.subr.bf16.mxu1 %v1996_v0  ;;  %v1727_v26 = vpack.c.bf16 %v811_v25, %v810_v22  ;;  %v813_v32 = vld [vmem:[%s2584_s14 + $0x28] sm:$0xff]  ;;  %v734_v35 = vld [vmem:[%s2583_s13 + $0x38] sm:$0xff]  ;;  %v814_v36 = vld [vmem:[%s2584_s14 + $0x30] sm:$0xff] }
  0xb7   :  { %v1730_v33 = vpack.c.bf16 %v813_v32, %v812_v30  ;;  %v815_v38 = vld [vmem:[%s2584_s14 + $0x38] sm:$0xff]  ;;  %v1329_v44 = vld [vmem:[#allocation13] ss:$0 sm:$0xff]  ;;  %v972_v53 = vld [vmem:[%s2586_s16] sm:$0xff] }
  0xb8   :  { %1683 = vmatpush3.bf16.msra.mxu0 %v1682_v34  ;;  %v733_v34 = vld [vmem:[%s2583_s13 + $0x30] sm:$0xff]  ;;  %v973_v54 = vld [vmem:[%s2586_s16 + $0x8] sm:$0xff]  ;;  %v1053_v15 = vld [vmem:[%s2587_s17] sm:$0xff] }
  0xb9   :  { %1674 = vmatpush3.bf16.msra.mxu1 %v1673_v27  ;;  %1684 = vmatprep.subr.bf16.mxu0 %v1996_v0  ;;  %v731_v27 = vld [vmem:[%s2583_s13 + $0x20] sm:$0xff]  ;;  %v1721_v37 = vpack.c.bf16 %v734_v35, %v733_v34  ;;  %v1326_v14 = vld [vmem:[#allocation11] ss:$0 sm:$0xff]  ;;  %v1055_v22 = vld [vmem:[%s2587_s17 + $0x10] sm:$0xff] }
  0xba   :  { %1687 = vmatprep.subr.bf16.mxu1 %v1996_v0  ;;  %v1718_v31 = vpack.c.bf16 %v732_v29, %v731_v27  ;;  %v1057_v25 = vld [vmem:[%s2587_s17 + $0x20] sm:$0xff]  ;;  %v1059_v29 = vld [vmem:[%s2587_s17 + $0x30] sm:$0xff]  ;;  %v1060_v30 = vld [vmem:[%s2587_s17 + $0x38] sm:$0xff] }
  0xbb   :  { %v1212_v32 = vld [vmem:[%s2589_s19] sm:$0xff]  ;;  %v1214_v35 = vld [vmem:[%s2589_s19 + $0x10] sm:$0xff] }
  0xbc   :  { %1473 = vmatmul.mubr.msk.f32.vlgmr.msra.gmra.mrb[2].mxu1 %vm316_vm3, %v2258_v28  ;;  %1686 = vmatpush3.bf16.msra.mxu0 %v1685_v39  ;;  %v1733_v39 = vpack.c.bf16 %v815_v38, %v814_v36  ;;  %v1215_v36 = vld [vmem:[%s2589_s19 + $0x18] sm:$0xff]  ;;  %v1216_v38 = vld [vmem:[%s2589_s19 + $0x20] sm:$0xff] }
  0xbd   :  { %1502 = vmatprep.mubr.msk.f32.mxu1 %vm1997_vm0, %v1998_v1  ;;  %1689 = vmatpush3.bf16.msra.mxu1 %v1688_v40 }
  0xbe   :  { %1690 = vmatprep.subr.bf16.mxu1 %v1996_v0  ;;  %1693 = vmatprep.subr.bf16.mxu0 %v1996_v0 }
  0xbf   :  { %1492 = vmatmul.mubr.msk.f32.vlgmr.msra.gmra.mrb[2].mxu0 %vm316_vm3, %v2258_v28 }
  0xc0   :  { %1695 = vmatpush3.bf16.msra.mxu0 %v1694_v43  ;;  %1521 = vmatprep.mubr.msk.f32.mxu0 %vm1997_vm0, %v1998_v1 }
  0xc1   :  { %1696 = vmatprep.subr.bf16.mxu0 %v1996_v0  ;;  %1692 = vmatpush3.bf16.msra.mxu1 %v1691_v49 }
  0xc2   :  { %1705 = vmatprep.subr.bf16.mxu1 %v1996_v0 }
  0xc4   :  { %1698 = vmatpush3.bf16.msra.mxu0 %v1697_v46 }
  0xc5   :  { %1699 = vmatprep.subr.bf16.mxu0 %v1996_v0 }
  0xc8   :  { %1701 = vmatpush3.bf16.msra.mxu0 %v1700_v52  ;;  %v896_v52 = vld [vmem:[%s2585_s15] sm:$0xff]  ;;  %s1955_s15 = scalar_lea.vmem %s1309_s23, 128 }
  0xc9   :  { %1702 = vmatprep.subr.bf16.mxu0 %v1996_v0  ;;  %p1956_p0 = scmp.ne.s32.totalorder %s1309_s23, %s1955_s15  ;;  %p1961_p2 = scmp.lt.s32.totalorder %s1955_s15, %s1955_s15 }
  0xcb   :  { %p1962_p3 = por %p1961_p2, %p1960_p1 }
  0xcc   :  { %1704 = vmatpush3.bf16.msra.mxu0 %v1703_v55  ;;  %v974_v55 = vld [vmem:[%s2586_s16 + $0x10] sm:$0xff] }
  0xcd   :  { %1723 = vmatprep.subr.bf16.mxu0 %v1996_v0  ;;  %p1963_p4 = pnand %p1962_p3, %p1956_p0 }
  0xcf   :  { %1522 = vmatmul.mubr.msk.f32.vlgmr.msra.gmra.mrb[4].mxu0 %vm316_vm3, %v2258_v28 }
  0xd0   :  { %1570 = vmatprep.mubr.msk.f32.mxu0 %vm1997_vm0, %v1998_v1  ;;  %1725 = vmatpush3.bf16.msra.mxu0 %v1724_v18 }
  0xd1   :  { %1726 = vmatprep.subr.bf16.mxu0 %v1996_v0 }
  0xd4   :  { %1728 = vmatpush3.bf16.msra.mxu0 %v1727_v26  ;;  %v1058_v26 = vld [vmem:[%s2587_s17 + $0x28] sm:$0xff] }
  0xd5   :  { %1729 = vmatprep.subr.bf16.mxu0 %v1996_v0  ;;  %v1754_v27 = vpack.c.bf16 %v1058_v26, %v1057_v25 }
  0xd8   :  { %1731 = vmatpush3.bf16.msra.mxu0 %v1730_v33  ;;  %v1213_v33 = vld [vmem:[%s2589_s19 + $0x8] sm:$0xff] }
  0xd9   :  { %1732 = vmatprep.subr.bf16.mxu0 %v1996_v0  ;;  %v1772_v34 = vpack.c.bf16 %v1213_v33, %v1212_v32 }
  0xdc   :  { %1734 = vmatpush3.bf16.msra.mxu0 %v1733_v39  ;;  %v1217_v39 = vld [vmem:[%s2589_s19 + $0x28] sm:$0xff] }
  0xdd   :  { %1735 = vmatprep.subr.bf16.mxu0 %v1996_v0 }
 0x17e   :  { %v304_v56 = vpop.f32.mrb[0].mxu1 }
 0x17f   :  { %v1455_v57 = vpop.f32.mrb[1].mxu1 }
 0x180   :  { %v975_v57 = vld [vmem:[%s2586_s16 + $0x18] sm:$0xff] }
 0x182   :  { %v230_v58 = vpop.f32.mrb[0].mxu0 }
 0x183   :  { %v305_v59 = vadd.f32 %v304_v56, %v230_v58  ;;  %v1448_v60 = vpop.f32.mrb[1].mxu0  ;;  %v1736_v56 = vpack.c.bf16 %v973_v54, %v972_v53  ;;  %v1739_v58 = vpack.c.bf16 %v975_v57, %v974_v55  ;;  %v1139_v54 = vld [vmem:[%s2610_s10 + $0x28] sm:$0xff] }
 0x184   :  { %v977_v60 = vld [vmem:[%s2586_s16 + $0x28] sm:$0xff] }
 0x18f   :  { %v386_v61 = vpop.f32.mrb[2].mxu1 }
 0x190   :  { %v390_v63 = vadd.f32 %v386_v61, %v305_v59  ;;  %v1474_v2 = vpop.f32.mrb[3].mxu1  ;;  %v976_v59 = vld [vmem:[%s2586_s16 + $0x20] sm:$0xff] }
 0x191   :  { %v1742_v61 = vpack.c.bf16 %v977_v60, %v976_v59 }
 0x192   :  { %v398_v5 = vadd.f32 %v1323_v62, %v390_v63  ;;  %v478_v11 = vpop.f32.mrb[2].mxu0  ;;  %v978_v62 = vld [vmem:[%s2586_s16 + $0x30] sm:$0xff]  ;;  %v979_v63 = vld [vmem:[%s2586_s16 + $0x38] sm:$0xff] }
 0x193   :  { %v1493_v12 = vpop.f32.mrb[3].mxu0  ;;  %v1745_v2 = vpack.c.bf16 %v979_v63, %v978_v62 }
 0x194   :  { %v2345_v7 = vmax.f32 %v398_v5, 0.0 }
 0x196   :  { %1503 = vmatmul.mubr.msk.f32.vlgmr.msra.gmra.mrb[4].mxu1 %vm160_vm2, %v2345_v7 }
 0x197   :  { %1707 = vmatpush3.bf16.msra.mxu1 %v1706_v6  ;;  %1532 = vmatprep.mubr.msk.f32.mxu1 %vm1997_vm0, %v1998_v1 }
 0x198   :  { %1708 = vmatprep.subr.bf16.mxu1 %v1996_v0 }
 0x19b   :  { %1710 = vmatpush3.bf16.msra.mxu1 %v1709_v10 }
 0x19c   :  { %1711 = vmatprep.subr.bf16.mxu1 %v1996_v0 }
 0x19e   :  { %1533 = vmatmul.mubr.msk.f32.vlgmr.msra.gmra.mrb[6].mxu1 %vm160_vm2, %v2345_v7 }
 0x19f   :  { %1551 = vmatprep.mubr.msk.f32.mxu1 %vm1997_vm0, %v1998_v1  ;;  %1713 = vmatpush3.bf16.msra.mxu1 %v1712_v16  ;;  %v1054_v16 = vld [vmem:[%s2587_s17 + $0x8] sm:$0xff] }
 0x1a0   :  { %1714 = vmatprep.subr.bf16.mxu1 %v1996_v0  ;;  %v1748_v20 = vpack.c.bf16 %v1054_v16, %v1053_v15 }
 0x1a2   :  { %v641_v19 = vpop.f32.mrb[4].mxu0 }
 0x1a3   :  { %v1523_v23 = vpop.f32.mrb[5].mxu0  ;;  %1716 = vmatpush3.bf16.msra.mxu1 %v1715_v24 }
 0x1a4   :  { %1717 = vmatprep.subr.bf16.mxu1 %v1996_v0  ;;  %v1056_v23 = vld [vmem:[%s2587_s17 + $0x18] sm:$0xff] }
 0x1a5   :  { %v1751_v24 = vpack.c.bf16 %v1056_v23, %v1055_v22 }
 0x1a7   :  { %1719 = vmatpush3.bf16.msra.mxu1 %v1718_v31  ;;  %v1757_v31 = vpack.c.bf16 %v1060_v30, %v1059_v29 }
 0x1a8   :  { %1720 = vmatprep.subr.bf16.mxu1 %v1996_v0 }
 0x1ab   :  { %1722 = vmatpush3.bf16.msra.mxu1 %v1721_v37  ;;  %v1775_v37 = vpack.c.bf16 %v1215_v36, %v1214_v35 }
 0x1ac   :  { %1573 = vmatprep.subr.mxu1 %v1998_v1 }
 0x269   :  { %v551_v40 = vpop.f32.mrb[4].mxu1 }
 0x26a   :  { %v552_v41 = vadd.f32 %v551_v40, %v478_v11  ;;  %v1504_v42 = vpop.f32.mrb[5].mxu1  ;;  %v1778_v40 = vpack.c.bf16 %v1217_v39, %v1216_v38 }
 0x26b   :  { %v1219_v42 = vld [vmem:[%s2589_s19 + $0x38] sm:$0xff] }
 0x26c   :  { %v562_v18 = vadd.f32 %v1326_v14, %v552_v41  ;;  %v1218_v41 = vld [vmem:[%s2589_s19 + $0x30] sm:$0xff] }
 0x271   :  { %v711_v43 = vpop.f32.mrb[6].mxu1 }
 0x272   :  { %v712_v45 = vadd.f32 %v711_v43, %v641_v19  ;;  %v1534_v46 = vpop.f32.mrb[7].mxu1  ;;  %v1781_v43 = vpack.c.bf16 %v1219_v42, %v1218_v41 }
 0x274   :  { %v2419_v47 = vadd.f32 %v1329_v44, %v712_v45  ;;  %v1134_v44 = vld [vmem:[%s2610_s10] sm:$0xff]  ;;  %v1135_v45 = vld [vmem:[%s2610_s10 + $0x8] sm:$0xff] }
 0x276   :  { %v723_v48 = vand.u32 2147483647, %v2419_v47 }
 0x278   :  { %v724_v49 = vmul.f32 %v723_v48, %v723_v48 }
 0x27a   :  { %v725_v50 = vmul.f32 %v724_v49, %v724_v49 }
 0x27c   :  { %v726_v51 = vmul.f32 %v725_v50, %v723_v48  ;;  %v1760_v48 = vpack.c.bf16 %v1135_v45, %v1134_v44 }
 0x27e   :  { %1552 = vmatmul.mubr.msk.f32.vlgmr.msra.gmra.mrb[8].mxu1 %vm316_vm3, %v726_v51  ;;  %1571 = vmatmul.mubr.msk.f32.vlgmr.msra.gmra.mrb[6].mxu0 %vm316_vm3, %v726_v51  ;;  %v1136_v51 = vld [vmem:[%s2610_s10 + $0x10] sm:$0xff] }
 0x27f   :  { %1575 = vmatprep.mubr.msk.f32.mxu1 %vm1997_vm0, %v1998_v1  ;;  %1594 = vmatprep.mubr.msk.f32.mxu0 %vm1997_vm0, %v1998_v1 }
 0x280   :  { %1574 = vmatpush3.msra.mxu1 %v896_v52  ;;  %1737 = vmatpush3.bf16.msra.mxu0 %v1736_v56  ;;  %v1137_v52 = vld [vmem:[%s2610_s10 + $0x18] sm:$0xff]  ;;  %v1140_v56 = vld [vmem:[%s2610_s10 + $0x30] sm:$0xff] }
 0x281   :  { %1747 = vmatprep.subr.bf16.mxu1 %v1996_v0  ;;  %1738 = vmatprep.subr.bf16.mxu0 %v1996_v0  ;;  %v1763_v53 = vpack.c.bf16 %v1137_v52, %v1136_v51 }
 0x284   :  { %1740 = vmatpush3.bf16.msra.mxu0 %v1739_v58 }
 0x285   :  { %1741 = vmatprep.subr.bf16.mxu0 %v1996_v0 }
 0x288   :  { %1743 = vmatpush3.bf16.msra.mxu0 %v1742_v61 }
 0x289   :  { %1744 = vmatprep.subr.bf16.mxu0 %v1996_v0 }
 0x28c   :  { %1746 = vmatpush3.bf16.msra.mxu0 %v1745_v2 }
 0x28d   :  { %1759 = vmatprep.subr.bf16.mxu0 %v1996_v0 }
 0x351   :  { %v804_v3 = vpop.f32.mrb[8].mxu1  ;;  %v882_v4 = vpop.f32.mrb[6].mxu0 }
 0x352   :  { %v886_v5 = vmul.f32 %v882_v4, %v804_v3  ;;  %v1553_v6 = vpop.f32.mrb[9].mxu1  ;;  %v1572_v8 = vpop.f32.mrb[7].mxu0 }
 0x354   :  { %v888_v9 = vmax.f32 %v886_v5, 1e-45  ;;  %vm887_vm4 = vcmp.gt.f32.partialorder %v886_v5, 0.0 }
 0x356   :  { %1797 = vlog2.f32 %v888_v9 }
 0x360   :  { %v1798_v10 = vpop.eup %1797 }
 0x361   :  { %v890_v11 = vmul.f32 0.6931472, %v1798_v10 }
 0x363   :  { %v891_v12 = vmul.f32 -0.2, %v890_v11 }
 0x365   :  { %v892_v13 = vmul.f32 1.442695, %v891_v12 }
 0x367   :  { %1799 = vpow2.f32 %v892_v13 }
 0x371   :  { %v1800_v17 = vpop.eup %1799 }
 0x372   :  { %v894_v19 = vsel %vm887_vm4, %v1800_v17, 1e+12 }
 0x373   :  { %v895_v21 = vmul.f32 %v894_v19, %v562_v18 }
 0x375   :  { %1576 = vmatmul.mubr.msk.f32.vlgmr.msra.gmra.mrb[10].mxu1 %vm897_vm5, %v895_v21 }
 0x376   :  { %1749 = vmatpush3.bf16.msra.mxu1 %v1748_v20  ;;  %1613 = vmatprep.mubr.msk.f32.mxu1 %vm1997_vm0, %v1998_v1 }
 0x377   :  { %1750 = vmatprep.subr.bf16.mxu1 %v1996_v0 }
 0x37a   :  { %1752 = vmatpush3.bf16.msra.mxu1 %v1751_v24 }
 0x37b   :  { %1753 = vmatprep.subr.bf16.mxu1 %v1996_v0 }
 0x37e   :  { %1755 = vmatpush3.bf16.msra.mxu1 %v1754_v27 }
 0x37f   :  { %1756 = vmatprep.subr.bf16.mxu1 %v1996_v0 }
 0x382   :  { %1758 = vmatpush3.bf16.msra.mxu1 %v1757_v31 }
 0x383   :  { %1771 = vmatprep.subr.bf16.mxu1 %v1996_v0 }
 0x385   :  { %1614 = vmatmul.mubr.msk.f32.vlgmr.msra.gmra.mrb[12].mxu1 %vm316_vm3, %v2419_v47 }
 0x386   :  { %1773 = vmatpush3.bf16.msra.mxu1 %v1772_v34  ;;  %1651 = vmatprep.mubr.msk.f32.mxu1 %vm1997_vm0, %v1998_v1 }
 0x387   :  { %1774 = vmatprep.subr.bf16.mxu1 %v1996_v0 }
 0x38a   :  { %1776 = vmatpush3.bf16.msra.mxu1 %v1775_v37 }
 0x38b   :  { %1777 = vmatprep.subr.bf16.mxu1 %v1996_v0 }
 0x38e   :  { %1779 = vmatpush3.bf16.msra.mxu1 %v1778_v40 }
 0x38f   :  { %1780 = vmatprep.subr.bf16.mxu1 %v1996_v0 }
 0x392   :  { %1782 = vmatpush3.bf16.msra.mxu1 %v1781_v43 }
 0x395   :  { %1652 = vmatmul.mubr.msk.f32.vlgmr.msra.gmra.mrb[14].mxu1 %vm316_vm3, %v2419_v47 }
 0x448   :  { %v967_v46 = vpop.f32.mrb[10].mxu1 }
 0x449   :  { %v971_v49 = vmul.f32 %v967_v46, %v2419_v47  ;;  %v1577_v50 = vpop.f32.mrb[11].mxu1  ;;  %v1138_v47 = vld [vmem:[%s2610_s10 + $0x20] sm:$0xff] }
 0x44a   :  { %v1766_v55 = vpack.c.bf16 %v1139_v54, %v1138_v47 }
 0x44b   :  { %1595 = vmatmul.mubr.msk.f32.vlgmr.msra.gmra.mrb[8].mxu0 %vm316_vm3, %v971_v49 }
 0x44c   :  { %1761 = vmatpush3.bf16.msra.mxu0 %v1760_v48  ;;  %1632 = vmatprep.mubr.msk.f32.mxu0 %vm1997_vm0, %v1998_v1  ;;  %v1141_v1 = vld [vmem:[%s2610_s10 + $0x38] sm:$0xff] }
 0x44d   :  { %1762 = vmatprep.subr.bf16.mxu0 %v1996_v0  ;;  %v1769_v57 = vpack.c.bf16 %v1141_v1, %v1140_v56 }
 0x450   :  { %1764 = vmatpush3.bf16.msra.mxu0 %v1763_v53 }
 0x451   :  { %1765 = vmatprep.subr.bf16.mxu0 %v1996_v0 }
 0x454   :  { %1767 = vmatpush3.bf16.msra.mxu0 %v1766_v55 }
 0x455   :  { %1768 = vmatprep.subr.bf16.mxu0 %v1996_v0 }
 0x458   :  { %v1130_v58 = vpop.f32.mrb[12].mxu1  ;;  %1770 = vmatpush3.bf16.msra.mxu0 %v1769_v57 }
 0x459   :  { %v1615_v59 = vpop.f32.mrb[13].mxu1 }
 0x45b   :  { %1633 = vmatmul.mubr.msk.f32.vlgmr.msra.gmra.mrb[10].mxu0 %vm316_vm3, %v971_v49 }
 0x468   :  { %v1286_v60 = vpop.f32.mrb[14].mxu1 }
 0x469   :  { %v1653_v61 = vpop.f32.mrb[15].mxu1 }
 0x51e   :  { %v1049_v62 = vpop.f32.mrb[8].mxu0 }
 0x51f   :  { %v1290_v63 = vmul.f32 %v1130_v58, %v1049_v62  ;;  %v1596_v2 = vpop.f32.mrb[9].mxu0 }
 0x521   :  { %v1291_v4 = vadd.f32 %v1290_v63, %v2258_v28 }
 0x52e   :  { %v1208_v3 = vpop.f32.mrb[10].mxu0 }
 0x52f   :  { %v1292_v5 = vmul.f32 %v1286_v60, %v1208_v3  ;;  %v1634_v6 = vpop.f32.mrb[11].mxu0 }
 0x531   :  { %v1293_v8 = vadd.f32 %v1292_v5, %v1291_v4 }
 0x533   :  { %1295 = vrot.lane.b32.xlu0 %v1293_v8, %s1999_s24 }
 0x5a5   :  { %v1296_v0 = vpop.permute.xlu0 %1295 }
 0x5a6   :  { %v1298_v9 = vsel %vm160_vm2, %v2345_v7, %v1296_v0 }
 0x5a7   :  { %v1300_v10 = vsel %vm1299_vm6, %v1298_v9, 0.0 }
 0x5a8   :  { %1301 = vst [vmem:[#allocation14] sm:$0xff] %v1300_v10 }
 0x5a9   :  { %1966 = shalt.err (!%p1963_p4)
}
 0x5aa   :  { %s2611_s18 = sld [smem:[#allocation26_spill]] }
 0x5b0   :  { %s1967_s11 = scalar_lea.hbm %s2611_s18, 128 }
 0x5b1   :  { %p1968_p5 = scmp.ne.s32.totalorder %s2611_s18, %s1967_s11  ;;  %p1971_p6 = scmp.lt.u32.totalorder %s1967_s11, %s2611_s18 }
 0x5b3   :  { %p1973_p7 = pnand %p1971_p6, %p1968_p5 }
 0x5b5   :  { %1976 = shalt.err (!%p1973_p7)
}
 0x5b6   :  { %1311 = dma.vmem_to_hbm [thread:$0]  %s1309_s23, 128, %s2611_s18, [#allocation4]  }
 0x5b7   :  { %1985 = dma.done.wait [#allocation4], 128  }
 0x5b8   :  { %1986 = vsyncadd [#allocation4], 4294967168 }
 0x5b9   :  { %1315 = vsyncpa [#allocation3], 1 }
 0x5ba   :  { %1316 = vsyncpa [#allocation6], 1 }
 0x5bb   :  { %1317 = vsyncpa [#allocation9], 1 }
 0x5bc   :  { %1318 = vsyncpa [#allocation12], 1 }
 0x5bd   :  { %1319 = vsyncpa [#allocation4], 1 }

</bundles_post_ra>
